<compile_context>
chip_gen: v7x
topology: tpu7x:2x2x1
jax: 0.10.0
libtpu: 0.0.40
codegen_flags: <defaults>
</compile_context>

<pallas_src>
import functools

import jax
import jax.numpy as jnp
from jax.experimental import pallas as pl
from jax.experimental.pallas import tpu as pltpu

IN_FEATURES = 2048
OUT_FEATURES = 10


def _round_up(v, m):
    return ((v + m - 1) // m) * m


def _linear_kernel(x_ref, w_ref, b_ref, o_ref):
    # x_ref: [TM, 2048]  w_ref: [2048, 10]  b_ref: [1, 10]  o_ref: [TM, 10]
    acc = jnp.dot(x_ref[...], w_ref[...], preferred_element_type=jnp.float32)
    o_ref[...] = (acc + b_ref[...]).astype(o_ref.dtype)
    # NOTE: K (=2048) is not split into a grid axis, so the bias is added exactly once.


def predictor_forward(x, w_t, b, *, tm=1024):
    """x: [B, 2048], w_t: [2048, 10] (transposed nn.Linear weight), b: [10]. Returns [B, 10]."""
    B, K = x.shape
    assert K == IN_FEATURES
    N = OUT_FEATURES
    out_dtype = x.dtype

    x_bytes = jnp.dtype(x.dtype).itemsize
    o_bytes = jnp.dtype(out_dtype).itemsize

    # Tiny (80 KiB) weight cast so the MXU sees matching operand dtypes; negligible traffic.
    w = w_t.astype(x.dtype)
    b2 = b.astype(jnp.float32).reshape(1, N)

    # Batch tile: multiple of 8 sublanes, at least 2 grid tiles when B allows (v7x 2 TCs),
    # capped by `tm` and by a 32 MiB double-buffer budget for x.
    TM = min(tm, max(8, _round_up(pl.cdiv(B, 2), 8)))
    max_tm_for_vmem = max(8, (((32 << 20) // (2 * IN_FEATURES * x_bytes)) // 8) * 8)
    TM = min(TM, max_tm_for_vmem)

    grid = (pl.cdiv(B, TM),)  # ragged last block handled by Pallas; no jnp.pad of x

    # Explicit scoped-VMEM limit (v5e default is 16 MiB; TM=1024 f32 needs ~17 MiB).
    vmem_need = (
        2 * TM * IN_FEATURES * x_bytes        # double-buffered x tile
        + 2 * TM * N * o_bytes                # double-buffered output tile
        + 2 * (IN_FEATURES * N + N) * x_bytes # weight + bias buffers (tiny)
    )
    vmem_limit = min(max(int(vmem_need) + (2 << 20), 32 << 20), 56 << 20)

    cost = pl.CostEstimate(
        flops=2 * B * IN_FEATURES * N,
        transcendentals=0,
        bytes_accessed=(
            B * IN_FEATURES * x_bytes      # x (dominant)
            + IN_FEATURES * N * x_bytes    # weight
            + B * N * o_bytes              # output
        ),
    )

    out = pl.pallas_call(
        _linear_kernel,
        out_shape=jax.ShapeDtypeStruct((B, N), out_dtype),
        grid_spec=pl.GridSpec(
            grid=grid,
            in_specs=[
                pl.BlockSpec((TM, IN_FEATURES), lambda i: (i, 0)),   # x: tiled over batch
                pl.BlockSpec((IN_FEATURES, N), lambda i: (0, 0)),    # weight: VMEM-resident
                pl.BlockSpec((1, N), lambda i: (0, 0)),              # bias: VMEM-resident
            ],
            out_specs=pl.BlockSpec((TM, N), lambda i: (i, 0)),
        ),
        compiler_params=pltpu.CompilerParams(
            dimension_semantics=("parallel",),  # shard batch tiles across TensorCores
            vmem_limit_bytes=vmem_limit,
        ),
        cost_estimate=cost,
    )(x, w, b2)

    return out


def init_params(key):
    """Deterministic init matching nn.Linear(2048, 10) shapes (kaiming-uniform-like bound)."""
    kw, kb = jax.random.split(key)
    bound = 1.0 / jnp.sqrt(IN_FEATURES)
    # PyTorch stores weight as [out, in]; keep the transposed copy [in, out] for the kernel.
    w = jax.random.uniform(kw, (OUT_FEATURES, IN_FEATURES), jnp.float32, -bound, bound)
    b = jax.random.uniform(kb, (OUT_FEATURES,), jnp.float32, -bound, bound)
    return w.T, b


if __name__ == "__main__":
    key = jax.random.PRNGKey(0)
    k_x, k_p, k_x2 = jax.random.split(key, 3)

    w_t, b = init_params(k_p)

    # Small-batch case (B=2): single 8-row block over a 2-row array (ragged, no wrapper pad).
    B = 2
    x = jax.random.normal(k_x, (B, IN_FEATURES), jnp.float32)
    fwd = jax.jit(functools.partial(predictor_forward, tm=1024))
    out = jax.block_until_ready(fwd(x, w_t, b))
    ref = x @ w_t + b
    assert out.shape == (B, OUT_FEATURES)
    assert jnp.allclose(out, ref, atol=1e-4, rtol=1e-4)

    # Multi-tile + ragged tail: B=50, tm=16 -> grid=(4,), last block has only 2 live rows.
    B2 = 50
    x2 = jax.random.normal(k_x2, (B2, IN_FEATURES), jnp.float32)
    fwd2 = jax.jit(functools.partial(predictor_forward, tm=16))
    out2 = jax.block_until_ready(fwd2(x2, w_t, b))
    ref2 = x2 @ w_t + b
    assert out2.shape == (B2, OUT_FEATURES)
    assert jnp.allclose(out2, ref2, atol=1e-4, rtol=1e-4)

    print("KERNEL_OK")
</pallas_src>

<mosaic_0001>
module attributes {stable_mosaic.version = 11 : i64} {
  func.func @_linear_kernel(%arg0: i32, %arg1: memref<8x2048xf32, #tpu.memory_space<vmem>>, %arg2: memref<2048x10xf32, #tpu.memory_space<vmem>>, %arg3: memref<1x10xf32, #tpu.memory_space<vmem>>, %arg4: memref<8x10xf32, #tpu.memory_space<vmem>>) attributes {dimension_semantics = [#tpu.dimension_semantics<parallel>], iteration_bounds = array<i64: 1>, scalar_prefetch = 0 : i64, scratch_operands = 0 : i64, tpu.core_type = #tpu.core_type<tc>, window_params = [{transform_indices = @transform_0, window_bounds = array<i64: 8, 2048>}, {pipeline_mode = #tpu.pipeline_mode<synchronous>, transform_indices = @transform_1, window_bounds = array<i64: 2048, 10>}, {pipeline_mode = #tpu.pipeline_mode<synchronous>, transform_indices = @transform_2, window_bounds = array<i64: 1, 10>}, {transform_indices = @transform_3, window_bounds = array<i64: 8, 10>}]} {
    %c0 = arith.constant 0 : index
    %c0_0 = arith.constant 0 : index
    %0 = vector.load %arg1[%c0, %c0_0] : memref<8x2048xf32, #tpu.memory_space<vmem>>, vector<8x2048xf32>
    %c0_1 = arith.constant 0 : index
    %c0_2 = arith.constant 0 : index
    %1 = vector.load %arg2[%c0_1, %c0_2] : memref<2048x10xf32, #tpu.memory_space<vmem>>, vector<2048x10xf32>
    %cst = arith.constant dense<0.000000e+00> : vector<8x10xf32>
    %2 = tpu.matmul %0, %1, %cst {dimension_numbers = #tpu.dot_dimension_numbers<[1], [0], [0], [1], [0, 0, 1, 1], [], []>} : vector<8x2048xf32>, vector<2048x10xf32>, vector<8x10xf32> -> vector<8x10xf32>
    %c0_3 = arith.constant 0 : index
    %c0_4 = arith.constant 0 : index
    %3 = vector.load %arg3[%c0_3, %c0_4] : memref<1x10xf32, #tpu.memory_space<vmem>>, vector<1x10xf32>
    %4 = vector.broadcast %3 : vector<1x10xf32> to vector<8x10xf32>
    %5 = arith.addf %2, %4 : vector<8x10xf32>
    %c0_5 = arith.constant 0 : index
    %c0_6 = arith.constant 0 : index
    %6 = vector.load %arg4[%c0_5, %c0_6] : memref<8x10xf32, #tpu.memory_space<vmem>>, vector<8x10xf32>
    tpu.vector_store %arg4[%c0_5, %c0_6], %5 {strides = array<i32>} : memref<8x10xf32, #tpu.memory_space<vmem>>, vector<8x10xf32>,
    return
  }
  func.func @transform_0(%arg0: i32) -> (i32, i32) {
    %c0_i32 = arith.constant 0 : i32
    %c0_i32_0 = arith.constant 0 : i32
    return %arg0, %c0_i32 : i32, i32
  }
  func.func @transform_1(%arg0: i32) -> (i32, i32) {
    %c0_i32 = arith.constant 0 : i32
    %c0_i32_0 = arith.constant 0 : i32
    %c0_i32_1 = arith.constant 0 : i32
    return %c0_i32, %c0_i32_0 : i32, i32
  }
  func.func @transform_2(%arg0: i32) -> (i32, i32) {
    %c0_i32 = arith.constant 0 : i32
    %c0_i32_0 = arith.constant 0 : i32
    %c0_i32_1 = arith.constant 0 : i32
    return %c0_i32, %c0_i32_0 : i32, i32
  }
  func.func @transform_3(%arg0: i32) -> (i32, i32) {
    %c0_i32 = arith.constant 0 : i32
    %c0_i32_0 = arith.constant 0 : i32
    return %arg0, %c0_i32 : i32, i32
  }
}

</mosaic_0001>

<bundles_post_ra>
// kernel: predictor_forward.1
= control target key start
LH: loop header
LB: loop body
LE: loop exit
PB: predicated region body
PF: predicated region fallthrough
CT: control target
= control target key end

     0   :  { %8 = vsyncpa [#allocation3], 0  ;;  %v1613_v54 = vmov 1983009808   ;;  %v317_v56 = vlaneseq  ;;  %vm1030_vm0 = vcmask 80896   ;;  %s2534_s0 = inlined_call_operand.vmem [shape: f32[2,2048], index: 0, kind: input, shape index: {}]   ;;  %s2535_s1 = inlined_call_operand.vmem [shape: f32[2048,10], index: 1, kind: input, shape index: {}]   ;;  %s2536_s2 = inlined_call_operand.vmem [shape: f32[1,10], index: 2, kind: input, shape index: {}]   ;;  %s2537_s3 = inlined_call_operand.hbm [shape: f32[2,10], index: 3, kind: output, shape index: {}]  }
   0x1   :  { %v47_v0 = vld [vmem:[%s2535_s1 + $0x80] sm:$0xff]  ;;  %v48_v1 = vld [vmem:[%s2535_s1 + $0x88] sm:$0xff]  ;;  %v49_v12 = vld [vmem:[%s2535_s1 + $0x90] sm:$0xff]  ;;  %v315_v55 = vunpack.c.l.s4 %v1613_v54 }
   0x2   :  { %v1329_v2 = vpack.c.bf16 %v48_v1, %v47_v0  ;;  %v31_v3 = vld [vmem:[%s2535_s1] sm:$0xff]  ;;  %v32_v4 = vld [vmem:[%s2535_s1 + $0x8] sm:$0xff]  ;;  %v50_v13 = vld [vmem:[%s2535_s1 + $0x98] sm:$0xff] }
   0x3   :  { %v79_v5 = vld [vmem:[%s2535_s1 + $0x180] sm:$0xff]  ;;  %v1331_v6 = vpack.c.bf16 %v32_v4, %v31_v3  ;;  %v80_v7 = vld [vmem:[%s2535_s1 + $0x188] sm:$0xff]  ;;  %v33_v14 = vld [vmem:[%s2535_s1 + $0x10] sm:$0xff]  ;;  %v1333_v15 = vpack.c.bf16 %v50_v13, %v49_v12 }
   0x4   :  { %v63_v8 = vld [vmem:[%s2535_s1 + $0x100] sm:$0xff]  ;;  %v64_v9 = vld [vmem:[%s2535_s1 + $0x108] sm:$0xff]  ;;  %1330 = vmatprep.subr.bf16.mxu0 %v1329_v2  ;;  %v1361_v10 = vpack.c.bf16 %v80_v7, %v79_v5  ;;  %v34_v16 = vld [vmem:[%s2535_s1 + $0x18] sm:$0xff]  ;;  %v316_v5 = vunpack.c.0.s8 %v315_v55 }
   0x5   :  { %v1363_v11 = vpack.c.bf16 %v64_v9, %v63_v8  ;;  %1332 = vmatpush3.bf16.msra.mxu0 %v1331_v6  ;;  %v81_v17 = vld [vmem:[%s2535_s1 + $0x190] sm:$0xff]  ;;  %v82_v18 = vld [vmem:[%s2535_s1 + $0x198] sm:$0xff]  ;;  %v1335_v19 = vpack.c.bf16 %v34_v16, %v33_v14  ;;  %v51_v23 = vld [vmem:[%s2535_s1 + $0xa0] sm:$0xff]  ;;  %v318_v6 = vshrl.u32 %v317_v56, 7 }
   0x6   :  { %1362 = vmatprep.subr.bf16.mxu1 %v1361_v10  ;;  %v1365_v20 = vpack.c.bf16 %v82_v18, %v81_v17  ;;  %v65_v21 = vld [vmem:[%s2535_s1 + $0x110] sm:$0xff]  ;;  %v66_v22 = vld [vmem:[%s2535_s1 + $0x118] sm:$0xff]  ;;  %1334 = vmatprep.subr.bf16.mxu0 %v1333_v15  ;;  %v52_v25 = vld [vmem:[%s2535_s1 + $0xa8] sm:$0xff] }
   0x7   :  { %1364 = vmatpush3.bf16.msra.mxu1 %v1363_v11  ;;  %v1367_v24 = vpack.c.bf16 %v66_v22, %v65_v21  ;;  %v35_v26 = vld [vmem:[%s2535_s1 + $0x20] sm:$0xff]  ;;  %v36_v27 = vld [vmem:[%s2535_s1 + $0x28] sm:$0xff]  ;;  %v1337_v28 = vpack.c.bf16 %v52_v25, %v51_v23  ;;  %v53_v35 = vld [vmem:[%s2535_s1 + $0xb0] sm:$0xff]  ;;  %v1808_v22 = vsub.s32 %v316_v5, %v318_v6 }
   0x8   :  { %1366 = vmatprep.subr.bf16.mxu1 %v1365_v20  ;;  %v83_v29 = vld [vmem:[%s2535_s1 + $0x1a0] sm:$0xff]  ;;  %v84_v30 = vld [vmem:[%s2535_s1 + $0x1a8] sm:$0xff]  ;;  %v1339_v32 = vpack.c.bf16 %v36_v27, %v35_v26  ;;  %v54_v36 = vld [vmem:[%s2535_s1 + $0xb8] sm:$0xff] }
   0x9   :  { %v67_v31 = vld [vmem:[%s2535_s1 + $0x120] sm:$0xff]  ;;  %1336 = vmatpush3.bf16.msra.mxu0 %v1335_v19  ;;  %v1369_v33 = vpack.c.bf16 %v84_v30, %v83_v29  ;;  %v68_v34 = vld [vmem:[%s2535_s1 + $0x128] sm:$0xff]  ;;  %v1341_v37 = vpack.c.bf16 %v54_v36, %v53_v35  ;;  %v37_v38 = vld [vmem:[%s2535_s1 + $0x30] sm:$0xff] }
   0xa   :  { %1338 = vmatprep.subr.bf16.mxu0 %v1337_v28  ;;  %v38_v39 = vld [vmem:[%s2535_s1 + $0x38] sm:$0xff]  ;;  %v85_v40 = vld [vmem:[%s2535_s1 + $0x1b0] sm:$0xff]  ;;  %v1371_v41 = vpack.c.bf16 %v68_v34, %v67_v31  ;;  %v55_v46 = vld [vmem:[%s2535_s1 + $0xc0] sm:$0xff] }
   0xb   :  { %1368 = vmatpush3.bf16.msra.mxu1 %v1367_v24  ;;  %v86_v42 = vld [vmem:[%s2535_s1 + $0x1b8] sm:$0xff]  ;;  %v69_v43 = vld [vmem:[%s2535_s1 + $0x130] sm:$0xff]  ;;  %v56_v47 = vld [vmem:[%s2535_s1 + $0xc8] sm:$0xff]  ;;  %v1343_v48 = vpack.c.bf16 %v38_v39, %v37_v38 }
   0xc   :  { %1370 = vmatprep.subr.bf16.mxu1 %v1369_v33  ;;  %v1373_v44 = vpack.c.bf16 %v86_v42, %v85_v40  ;;  %v70_v45 = vld [vmem:[%s2535_s1 + $0x138] sm:$0xff]  ;;  %v87_v49 = vld [vmem:[%s2535_s1 + $0x1c0] sm:$0xff]  ;;  %v88_v50 = vld [vmem:[%s2535_s1 + $0x1c8] sm:$0xff]  ;;  %v1345_v51 = vpack.c.bf16 %v56_v47, %v55_v46 }
   0xd   :  { %1340 = vmatpush3.bf16.msra.mxu0 %v1339_v32  ;;  %v39_v52 = vld [vmem:[%s2535_s1 + $0x40] sm:$0xff]  ;;  %v40_v53 = vld [vmem:[%s2535_s1 + $0x48] sm:$0xff]  ;;  %v1375_v57 = vpack.c.bf16 %v70_v45, %v69_v43  ;;  %v57_v58 = vld [vmem:[%s2535_s1 + $0xd0] sm:$0xff]  ;;  %v1377_v60 = vpack.c.bf16 %v88_v50, %v87_v49 }
   0xe   :  { %1342 = vmatprep.subr.bf16.mxu0 %v1341_v37  ;;  %v58_v59 = vld [vmem:[%s2535_s1 + $0xd8] sm:$0xff]  ;;  %v71_v61 = vld [vmem:[%s2535_s1 + $0x140] sm:$0xff]  ;;  %v72_v62 = vld [vmem:[%s2535_s1 + $0x148] sm:$0xff]  ;;  %v1347_v63 = vpack.c.bf16 %v40_v53, %v39_v52 }
   0xf   :  { %1372 = vmatpush3.bf16.msra.mxu1 %v1371_v41  ;;  %v89_v0 = vld [vmem:[%s2535_s1 + $0x1d0] sm:$0xff]  ;;  %v90_v1 = vld [vmem:[%s2535_s1 + $0x1d8] sm:$0xff]  ;;  %v1349_v2 = vpack.c.bf16 %v58_v59, %v57_v58  ;;  %v1379_v7 = vpack.c.bf16 %v72_v62, %v71_v61  ;;  %v59_v9 = vld [vmem:[%s2535_s1 + $0xe0] sm:$0xff] }
  0x10   :  { %1374 = vmatprep.subr.bf16.mxu1 %v1373_v44  ;;  %v41_v3 = vld [vmem:[%s2535_s1 + $0x50] sm:$0xff]  ;;  %v42_v4 = vld [vmem:[%s2535_s1 + $0x58] sm:$0xff]  ;;  %v60_v10 = vld [vmem:[%s2535_s1 + $0xe8] sm:$0xff]  ;;  %v1381_v11 = vpack.c.bf16 %v90_v1, %v89_v0 }
  0x11   :  { %1344 = vmatpush3.bf16.msra.mxu0 %v1343_v48  ;;  %v73_v8 = vld [vmem:[%s2535_s1 + $0x150] sm:$0xff]  ;;  %v74_v12 = vld [vmem:[%s2535_s1 + $0x158] sm:$0xff]  ;;  %v91_v13 = vld [vmem:[%s2535_s1 + $0x1e0] sm:$0xff]  ;;  %v1351_v15 = vpack.c.bf16 %v42_v4, %v41_v3  ;;  %v1353_v18 = vpack.c.bf16 %v60_v10, %v59_v9 }
  0x12   :  { %1346 = vmatprep.subr.bf16.mxu0 %v1345_v51  ;;  %v92_v14 = vld [vmem:[%s2535_s1 + $0x1e8] sm:$0xff]  ;;  %v43_v16 = vld [vmem:[%s2535_s1 + $0x60] sm:$0xff]  ;;  %v61_v19 = vld [vmem:[%s2535_s1 + $0xf0] sm:$0xff]  ;;  %v1383_v23 = vpack.c.bf16 %v74_v12, %v73_v8 }
  0x13   :  { %1376 = vmatpush3.bf16.msra.mxu1 %v1375_v57  ;;  %v44_v17 = vld [vmem:[%s2535_s1 + $0x68] sm:$0xff]  ;;  %v62_v20 = vld [vmem:[%s2535_s1 + $0xf8] sm:$0xff]  ;;  %v15_v21 = vld [vmem:[%s2534_s0] sm:$0xff]  ;;  %v1385_v24 = vpack.c.bf16 %v92_v14, %v91_v13 }
  0x14   :  { %1378 = vmatprep.subr.bf16.mxu1 %v1377_v60  ;;  %v19_v25 = vld [vmem:[%s2534_s0 + $0x20] sm:$0xff]  ;;  %v76_v29 = vld [vmem:[%s2535_s1 + $0x168] sm:$0xff]  ;;  %v1355_v34 = vpack.c.bf16 %v44_v17, %v43_v16  ;;  %v1357_v35 = vpack.c.bf16 %v62_v20, %v61_v19  ;;  %v93_v36 = vld [vmem:[%s2535_s1 + $0x1f0] sm:$0xff] }
  0x15   :  { %1348 = vmatpush3.bf16.msra.mxu0 %v1347_v63  ;;  %v23_v26 = vld [vmem:[%s2534_s0 + $0x40] sm:$0xff]  ;;  %v310_v30 = vcombine.low %v15_v21, %v19_v25  ;;  %v311_v32 = vcombine.high %v15_v21, %v19_v25  ;;  %v94_v37 = vld [vmem:[%s2535_s1 + $0x1f8] sm:$0xff]  ;;  %v45_v38 = vld [vmem:[%s2535_s1 + $0x70] sm:$0xff] }
  0x16   :  { %1350 = vmatprep.subr.bf16.mxu0 %v1349_v2  ;;  %v27_v27 = vld [vmem:[%s2534_s0 + $0x60] sm:$0xff]  ;;  %v46_v39 = vld [vmem:[%s2535_s1 + $0x78] sm:$0xff]  ;;  %v112_v46 = vld [vmem:[%s2535_s1 + $0x288] sm:$0xff]  ;;  %v1389_v47 = vpack.c.bf16 %v94_v37, %v93_v36 }
  0x17   :  { %1380 = vmatpush3.bf16.msra.mxu1 %v1379_v7  ;;  %v75_v28 = vld [vmem:[%s2535_s1 + $0x160] sm:$0xff]  ;;  %v312_v31 = vcombine.low %v23_v26, %v27_v27  ;;  %v313_v33 = vcombine.high %v23_v26, %v27_v27  ;;  %v320_v40 = vrot.slane %v310_v30, %v1808_v22  ;;  %v327_v42 = vrot.slane %v311_v32, %v1808_v22  ;;  %v77_v48 = vld [vmem:[%s2535_s1 + $0x170] sm:$0xff]  ;;  %v78_v49 = vld [vmem:[%s2535_s1 + $0x178] sm:$0xff] }
  0x18   :  { %1382 = vmatprep.subr.bf16.mxu1 %v1381_v11  ;;  %v1387_v44 = vpack.c.bf16 %v76_v29, %v75_v28  ;;  %v111_v45 = vld [vmem:[%s2535_s1 + $0x280] sm:$0xff]  ;;  %v1359_v52 = vpack.c.bf16 %v46_v39, %v45_v38  ;;  %v144_v54 = vld [vmem:[%s2535_s1 + $0x388] sm:$0xff]  ;;  %v1391_v58 = vpack.c.bf16 %v78_v49, %v77_v48  ;;  %v113_v59 = vld [vmem:[%s2535_s1 + $0x290] sm:$0xff] }
  0x19   :  { %1352 = vmatpush3.bf16.msra.mxu0 %v1351_v15  ;;  %v334_v41 = vrot.slane %v312_v31, %v1808_v22  ;;  %v341_v43 = vrot.slane %v313_v33, %v1808_v22  ;;  %v143_v53 = vld [vmem:[%s2535_s1 + $0x380] sm:$0xff]  ;;  %v1393_v55 = vpack.c.bf16 %v112_v46, %v111_v45  ;;  %v96_v57 = vld [vmem:[%s2535_s1 + $0x208] sm:$0xff]  ;;  %v114_v60 = vld [vmem:[%s2535_s1 + $0x298] sm:$0xff] }
  0x1a   :  { %1354 = vmatprep.subr.bf16.mxu0 %v1353_v18  ;;  %v95_v56 = vld [vmem:[%s2535_s1 + $0x200] sm:$0xff]  ;;  %v1425_v62 = vpack.c.bf16 %v144_v54, %v143_v53  ;;  %v128_v0 = vld [vmem:[%s2535_s1 + $0x308] sm:$0xff]  ;;  %v145_v2 = vld [vmem:[%s2535_s1 + $0x390] sm:$0xff]  ;;  %v1397_v5 = vpack.c.bf16 %v114_v60, %v113_v59 }
  0x1b   :  { %1384 = vmatpush3.bf16.msra.mxu1 %v1383_v23  ;;  %v343_v50 = vcombine.high %v320_v40, %v334_v41  ;;  %v345_v51 = vcombine.high %v327_v42, %v341_v43  ;;  %v342_v61 = vcombine.low %v320_v40, %v334_v41  ;;  %v127_v63 = vld [vmem:[%s2535_s1 + $0x300] sm:$0xff]  ;;  %v1395_v1 = vpack.c.bf16 %v96_v57, %v95_v56  ;;  %v146_v3 = vld [vmem:[%s2535_s1 + $0x398] sm:$0xff]  ;;  %v97_v6 = vld [vmem:[%s2535_s1 + $0x210] sm:$0xff] }
  0x1c   :  { %1386 = vmatprep.subr.bf16.mxu1 %v1385_v24  ;;  %v344_v4 = vcombine.low %v327_v42, %v341_v43  ;;  %v98_v7 = vld [vmem:[%s2535_s1 + $0x218] sm:$0xff]  ;;  %v1427_v8 = vpack.c.bf16 %v128_v0, %v127_v63  ;;  %v115_v9 = vld [vmem:[%s2535_s1 + $0x2a0] sm:$0xff]  ;;  %v116_v10 = vld [vmem:[%s2535_s1 + $0x2a8] sm:$0xff]  ;;  %v1429_v11 = vpack.c.bf16 %v146_v3, %v145_v2 }
  0x1d   :  { %1356 = vmatpush3.bf16.msra.mxu0 %v1355_v34  ;;  %534 = vmatprep.mubr.f32.mxu0 %v343_v50  ;;  %v129_v12 = vld [vmem:[%s2535_s1 + $0x310] sm:$0xff]  ;;  %v130_v13 = vld [vmem:[%s2535_s1 + $0x318] sm:$0xff]  ;;  %v1399_v14 = vpack.c.bf16 %v98_v7, %v97_v6  ;;  %v147_v15 = vld [vmem:[%s2535_s1 + $0x3a0] sm:$0xff]  ;;  %v1401_v17 = vpack.c.bf16 %v116_v10, %v115_v9 }
  0x1e   :  { %1358 = vmatprep.subr.bf16.mxu0 %v1357_v35  ;;  %604 = vmatprep.mubr.f32.mxu1 %v345_v51  ;;  %v148_v16 = vld [vmem:[%s2535_s1 + $0x3a8] sm:$0xff]  ;;  %v99_v18 = vld [vmem:[%s2535_s1 + $0x220] sm:$0xff]  ;;  %v1431_v20 = vpack.c.bf16 %v130_v13, %v129_v12  ;;  %v117_v21 = vld [vmem:[%s2535_s1 + $0x2b0] sm:$0xff] }
  0x1f   :  { %1388 = vmatpush3.bf16.msra.mxu1 %v1387_v44  ;;  %v100_v19 = vld [vmem:[%s2535_s1 + $0x228] sm:$0xff]  ;;  %v118_v23 = vld [vmem:[%s2535_s1 + $0x2b8] sm:$0xff]  ;;  %v1433_v24 = vpack.c.bf16 %v148_v16, %v147_v15  ;;  %v131_v25 = vld [vmem:[%s2535_s1 + $0x320] sm:$0xff] }
  0x20   :  { %1390 = vmatprep.subr.bf16.mxu1 %v1389_v47  ;;  %v132_v26 = vld [vmem:[%s2535_s1 + $0x328] sm:$0xff]  ;;  %v1403_v27 = vpack.c.bf16 %v100_v19, %v99_v18  ;;  %v149_v28 = vld [vmem:[%s2535_s1 + $0x3b0] sm:$0xff]  ;;  %v150_v29 = vld [vmem:[%s2535_s1 + $0x3b8] sm:$0xff]  ;;  %v1405_v30 = vpack.c.bf16 %v118_v23, %v117_v21 }
  0x21   :  { %1360 = vmatpush3.bf16.msra.mxu0 %v1359_v52  ;;  %v101_v31 = vld [vmem:[%s2535_s1 + $0x230] sm:$0xff]  ;;  %v102_v32 = vld [vmem:[%s2535_s1 + $0x238] sm:$0xff]  ;;  %v1435_v33 = vpack.c.bf16 %v132_v26, %v131_v25  ;;  %v119_v35 = vld [vmem:[%s2535_s1 + $0x2c0] sm:$0xff]  ;;  %v1437_v37 = vpack.c.bf16 %v150_v29, %v149_v28 }
  0x22   :  { %1394 = vmatprep.subr.bf16.mxu0 %v1393_v55  ;;  %v133_v34 = vld [vmem:[%s2535_s1 + $0x330] sm:$0xff]  ;;  %v120_v36 = vld [vmem:[%s2535_s1 + $0x2c8] sm:$0xff]  ;;  %v134_v38 = vld [vmem:[%s2535_s1 + $0x338] sm:$0xff]  ;;  %v1407_v41 = vpack.c.bf16 %v102_v32, %v101_v31 }
  0x23   :  { %1392 = vmatpush3.bf16.msra.mxu1 %v1391_v58  ;;  %v103_v39 = vld [vmem:[%s2535_s1 + $0x240] sm:$0xff]  ;;  %v152_v42 = vld [vmem:[%s2535_s1 + $0x3c8] sm:$0xff]  ;;  %v1409_v45 = vpack.c.bf16 %v120_v36, %v119_v35  ;;  %v1439_v51 = vpack.c.bf16 %v134_v38, %v133_v34  ;;  %v121_v52 = vld [vmem:[%s2535_s1 + $0x2d0] sm:$0xff] }
  0x24   :  { %535 = vmatmul.mubr.f32.vlgmr.msra.gmra.mrb[0].mxu0 %v342_v61  ;;  %1426 = vmatprep.subr.bf16.mxu1 %v1425_v62  ;;  %v151_v40 = vld [vmem:[%s2535_s1 + $0x3c0] sm:$0xff]  ;;  %v16_v43 = vld [vmem:[%s2534_s0 + $0x8] sm:$0xff]  ;;  %v122_v53 = vld [vmem:[%s2535_s1 + $0x2d8] sm:$0xff] }
  0x25   :  { %1396 = vmatpush3.bf16.msra.mxu0 %v1395_v1  ;;  %v20_v44 = vld [vmem:[%s2534_s0 + $0x28] sm:$0xff]  ;;  %v1441_v56 = vpack.c.bf16 %v152_v42, %v151_v40  ;;  %v135_v57 = vld [vmem:[%s2535_s1 + $0x340] sm:$0xff]  ;;  %v153_v62 = vld [vmem:[%s2535_s1 + $0x3d0] sm:$0xff]  ;;  %v1413_v2 = vpack.c.bf16 %v122_v53, %v121_v52 }
  0x26   :  { %605 = vmatmul.mubr.f32.vlgmr.msra.gmra.mrb[0].mxu1 %v344_v4  ;;  %1398 = vmatprep.subr.bf16.mxu0 %v1397_v5  ;;  %v104_v46 = vld [vmem:[%s2535_s1 + $0x248] sm:$0xff]  ;;  %v346_v49 = vcombine.low %v16_v43, %v20_v44  ;;  %v347_v50 = vcombine.high %v16_v43, %v20_v44  ;;  %v154_v63 = vld [vmem:[%s2535_s1 + $0x3d8] sm:$0xff]  ;;  %v105_v3 = vld [vmem:[%s2535_s1 + $0x250] sm:$0xff] }
  0x27   :  { %1428 = vmatpush3.bf16.msra.mxu1 %v1427_v8  ;;  %v24_v47 = vld [vmem:[%s2534_s0 + $0x48] sm:$0xff]  ;;  %v1411_v61 = vpack.c.bf16 %v104_v46, %v103_v39  ;;  %v106_v4 = vld [vmem:[%s2535_s1 + $0x258] sm:$0xff]  ;;  %v123_v6 = vld [vmem:[%s2535_s1 + $0x2e0] sm:$0xff]  ;;  %v1445_v10 = vpack.c.bf16 %v154_v63, %v153_v62 }
  0x28   :  { %1430 = vmatprep.subr.bf16.mxu1 %v1429_v11  ;;  %v28_v48 = vld [vmem:[%s2534_s0 + $0x68] sm:$0xff]  ;;  %v1986_v59 = vrot.slane %v346_v49, %v1808_v22  ;;  %v1989_v60 = vrot.slane %v347_v50, %v1808_v22  ;;  %v137_v11 = vld [vmem:[%s2535_s1 + $0x350] sm:$0xff]  ;;  %v138_v12 = vld [vmem:[%s2535_s1 + $0x358] sm:$0xff]  ;;  %v1415_v13 = vpack.c.bf16 %v106_v4, %v105_v3 }
  0x29   :  { %1400 = vmatpush3.bf16.msra.mxu0 %v1399_v14  ;;  %v348_v54 = vcombine.low %v24_v47, %v28_v48  ;;  %v349_v55 = vcombine.high %v24_v47, %v28_v48  ;;  %v136_v58 = vld [vmem:[%s2535_s1 + $0x348] sm:$0xff]  ;;  %v155_v14 = vld [vmem:[%s2535_s1 + $0x3e0] sm:$0xff]  ;;  %v1447_v19 = vpack.c.bf16 %v138_v12, %v137_v11  ;;  %v126_v21 = vld [vmem:[%s2535_s1 + $0x2f8] sm:$0xff] }
  0x2a   :  { %1402 = vmatprep.subr.bf16.mxu0 %v1401_v17  ;;  %v1443_v5 = vpack.c.bf16 %v136_v58, %v135_v57  ;;  %v124_v7 = vld [vmem:[%s2535_s1 + $0x2e8] sm:$0xff]  ;;  %v107_v17 = vld [vmem:[%s2535_s1 + $0x260] sm:$0xff]  ;;  %v158_v28 = vld [vmem:[%s2535_s1 + $0x3f8] sm:$0xff] }
  0x2b   :  { %1432 = vmatpush3.bf16.msra.mxu1 %v1431_v20  ;;  %v1998_v0 = vrot.slane %v348_v54, %v1808_v22  ;;  %v2001_v1 = vrot.slane %v349_v55, %v1808_v22  ;;  %v156_v15 = vld [vmem:[%s2535_s1 + $0x3e8] sm:$0xff]  ;;  %v1417_v16 = vpack.c.bf16 %v124_v7, %v123_v6  ;;  %v125_v20 = vld [vmem:[%s2535_s1 + $0x2f0] sm:$0xff]  ;;  %v110_v31 = vld [vmem:[%s2535_s1 + $0x278] sm:$0xff] }
  0x2c   :  { %1434 = vmatprep.subr.bf16.mxu1 %v1433_v24  ;;  %v108_v18 = vld [vmem:[%s2535_s1 + $0x268] sm:$0xff]  ;;  %v1449_v23 = vpack.c.bf16 %v156_v15, %v155_v14  ;;  %v139_v24 = vld [vmem:[%s2535_s1 + $0x360] sm:$0xff]  ;;  %v1421_v29 = vpack.c.bf16 %v126_v21, %v125_v20  ;;  %v141_v36 = vld [vmem:[%s2535_s1 + $0x370] sm:$0xff] }
  0x2d   :  { %1404 = vmatpush3.bf16.msra.mxu0 %v1403_v27  ;;  %v379_v8 = vcombine.high %v1986_v59, %v1998_v0  ;;  %v381_v9 = vcombine.high %v1989_v60, %v2001_v1  ;;  %v140_v25 = vld [vmem:[%s2535_s1 + $0x368] sm:$0xff]  ;;  %v1419_v26 = vpack.c.bf16 %v108_v18, %v107_v17  ;;  %v157_v27 = vld [vmem:[%s2535_s1 + $0x3f0] sm:$0xff]  ;;  %v207_v39 = vld [vmem:[%s2535_s1 + $0x580] sm:$0xff]  ;;  %v378_v47 = vcombine.low %v1986_v59, %v1998_v0 }
  0x2e   :  { %1406 = vmatprep.subr.bf16.mxu0 %v1405_v30  ;;  %v109_v30 = vld [vmem:[%s2535_s1 + $0x270] sm:$0xff]  ;;  %v1451_v32 = vpack.c.bf16 %v140_v25, %v139_v24  ;;  %v176_v34 = vld [vmem:[%s2535_s1 + $0x488] sm:$0xff]  ;;  %v1453_v35 = vpack.c.bf16 %v158_v28, %v157_v27  ;;  %v159_v42 = vld [vmem:[%s2535_s1 + $0x400] sm:$0xff]  ;;  %v380_v54 = vcombine.low %v1989_v60, %v2001_v1 }
  0x2f   :  { %1436 = vmatpush3.bf16.msra.mxu1 %v1435_v33  ;;  %674 = vmatprep.mubr.f32.mxu0 %v379_v8  ;;  %v175_v33 = vld [vmem:[%s2535_s1 + $0x480] sm:$0xff]  ;;  %v1423_v38 = vpack.c.bf16 %v110_v31, %v109_v30  ;;  %v208_v40 = vld [vmem:[%s2535_s1 + $0x588] sm:$0xff]  ;;  %v178_v46 = vld [vmem:[%s2535_s1 + $0x498] sm:$0xff] }
  0x30   :  { %1438 = vmatprep.subr.bf16.mxu1 %v1437_v37  ;;  %744 = vmatprep.mubr.f32.mxu1 %v381_v9  ;;  %v142_v37 = vld [vmem:[%s2535_s1 + $0x378] sm:$0xff]  ;;  %v160_v43 = vld [vmem:[%s2535_s1 + $0x408] sm:$0xff]  ;;  %v1489_v48 = vpack.c.bf16 %v208_v40, %v207_v39  ;;  %v191_v49 = vld [vmem:[%s2535_s1 + $0x500] sm:$0xff] }
  0x31   :  { %1408 = vmatpush3.bf16.msra.mxu0 %v1407_v41  ;;  %v1457_v41 = vpack.c.bf16 %v176_v34, %v175_v33  ;;  %v1455_v44 = vpack.c.bf16 %v142_v37, %v141_v36  ;;  %v192_v50 = vld [vmem:[%s2535_s1 + $0x508] sm:$0xff]  ;;  %v209_v52 = vld [vmem:[%s2535_s1 + $0x590] sm:$0xff]  ;;  %v210_v53 = vld [vmem:[%s2535_s1 + $0x598] sm:$0xff] }
  0x32   :  { %1410 = vmatprep.subr.bf16.mxu0 %v1409_v45  ;;  %v177_v45 = vld [vmem:[%s2535_s1 + $0x490] sm:$0xff]  ;;  %v162_v57 = vld [vmem:[%s2535_s1 + $0x418] sm:$0xff]  ;;  %v1491_v59 = vpack.c.bf16 %v192_v50, %v191_v49  ;;  %v179_v60 = vld [vmem:[%s2535_s1 + $0x4a0] sm:$0xff]  ;;  %v1493_v63 = vpack.c.bf16 %v210_v53, %v209_v52 }
  0x33   :  { %1440 = vmatpush3.bf16.msra.mxu1 %v1439_v51  ;;  %v1459_v51 = vpack.c.bf16 %v160_v43, %v159_v42  ;;  %v1461_v55 = vpack.c.bf16 %v178_v46, %v177_v45  ;;  %v193_v58 = vld [vmem:[%s2535_s1 + $0x510] sm:$0xff]  ;;  %v180_v62 = vld [vmem:[%s2535_s1 + $0x4a8] sm:$0xff]  ;;  %v211_v4 = vld [vmem:[%s2535_s1 + $0x5a0] sm:$0xff] }
  0x34   :  { %1442 = vmatprep.subr.bf16.mxu1 %v1441_v56  ;;  %v161_v56 = vld [vmem:[%s2535_s1 + $0x410] sm:$0xff]  ;;  %v1465_v9 = vpack.c.bf16 %v180_v62, %v179_v60  ;;  %v164_v11 = vld [vmem:[%s2535_s1 + $0x428] sm:$0xff]  ;;  %v195_v20 = vld [vmem:[%s2535_s1 + $0x520] sm:$0xff] }
  0x35   :  { %1412 = vmatpush3.bf16.msra.mxu0 %v1411_v61  ;;  %v194_v61 = vld [vmem:[%s2535_s1 + $0x518] sm:$0xff]  ;;  %v17_v0 = vld [vmem:[%s2534_s0 + $0x10] sm:$0xff]  ;;  %v1463_v3 = vpack.c.bf16 %v162_v57, %v161_v56  ;;  %v196_v21 = vld [vmem:[%s2535_s1 + $0x528] sm:$0xff] }
  0x36   :  { %1414 = vmatprep.subr.bf16.mxu0 %v1413_v2  ;;  %v21_v1 = vld [vmem:[%s2534_s0 + $0x30] sm:$0xff]  ;;  %v1495_v14 = vpack.c.bf16 %v194_v61, %v193_v58  ;;  %v214_v27 = vld [vmem:[%s2535_s1 + $0x5b8] sm:$0xff]  ;;  %v1499_v33 = vpack.c.bf16 %v196_v21, %v195_v20  ;;  %v183_v34 = vld [vmem:[%s2535_s1 + $0x4c0] sm:$0xff] }
  0x37   :  { %1444 = vmatpush3.bf16.msra.mxu1 %v1443_v5  ;;  %v25_v2 = vld [vmem:[%s2534_s0 + $0x50] sm:$0xff]  ;;  %v212_v5 = vld [vmem:[%s2535_s1 + $0x5a8] sm:$0xff]  ;;  %v382_v7 = vcombine.low %v17_v0, %v21_v1  ;;  %v383_v8 = vcombine.high %v17_v0, %v21_v1  ;;  %v166_v30 = vld [vmem:[%s2535_s1 + $0x438] sm:$0xff] }
  0x38   :  { %1446 = vmatprep.subr.bf16.mxu1 %v1445_v10  ;;  %v29_v6 = vld [vmem:[%s2534_s0 + $0x70] sm:$0xff]  ;;  %v163_v10 = vld [vmem:[%s2535_s1 + $0x420] sm:$0xff]  ;;  %v200_v50 = vld [vmem:[%s2535_s1 + $0x548] sm:$0xff] }
  0x39   :  { %1416 = vmatpush3.bf16.msra.mxu0 %v1415_v13  ;;  %v384_v12 = vcombine.low %v25_v2, %v29_v6  ;;  %v385_v13 = vcombine.high %v25_v2, %v29_v6  ;;  %v181_v15 = vld [vmem:[%s2535_s1 + $0x4b0] sm:$0xff]  ;;  %v2156_v17 = vrot.slane %v382_v7, %v1808_v22  ;;  %v2159_v18 = vrot.slane %v383_v8, %v1808_v22  ;;  %v215_v40 = vld [vmem:[%s2535_s1 + $0x5c0] sm:$0xff]  ;;  %v218_v53 = vld [vmem:[%s2535_s1 + $0x5d8] sm:$0xff] }
  0x3a   :  { %1418 = vmatprep.subr.bf16.mxu0 %v1417_v16  ;;  %v182_v16 = vld [vmem:[%s2535_s1 + $0x4b8] sm:$0xff]  ;;  %v1467_v25 = vpack.c.bf16 %v164_v11, %v163_v10  ;;  %v197_v37 = vld [vmem:[%s2535_s1 + $0x530] sm:$0xff]  ;;  %v167_v43 = vld [vmem:[%s2535_s1 + $0x440] sm:$0xff] }
  0x3b   :  { %1448 = vmatpush3.bf16.msra.mxu1 %v1447_v19  ;;  %v1497_v19 = vpack.c.bf16 %v212_v5, %v211_v4  ;;  %v2171_v24 = vrot.slane %v385_v13, %v1808_v22  ;;  %v1469_v28 = vpack.c.bf16 %v182_v16, %v181_v15  ;;  %v185_v46 = vld [vmem:[%s2535_s1 + $0x4d0] sm:$0xff]  ;;  %v199_v49 = vld [vmem:[%s2535_s1 + $0x540] sm:$0xff]  ;;  %v170_v56 = vld [vmem:[%s2535_s1 + $0x458] sm:$0xff] }
  0x3c   :  { %1450 = vmatprep.subr.bf16.mxu1 %v1449_v23  ;;  %v2168_v23 = vrot.slane %v384_v12, %v1808_v22  ;;  %v217_v52 = vld [vmem:[%s2535_s1 + $0x5d0] sm:$0xff]  ;;  %v1507_v57 = vpack.c.bf16 %v200_v50, %v199_v49  ;;  %v187_v58 = vld [vmem:[%s2535_s1 + $0x4e0] sm:$0xff]  ;;  %v202_v62 = vld [vmem:[%s2535_s1 + $0x558] sm:$0xff] }
  0x3d   :  { %1420 = vmatpush3.bf16.msra.mxu0 %v1419_v26  ;;  %v213_v26 = vld [vmem:[%s2535_s1 + $0x5b0] sm:$0xff]  ;;  %v1509_v61 = vpack.c.bf16 %v218_v53, %v217_v52  ;;  %v219_v0 = vld [vmem:[%s2535_s1 + $0x5e0] sm:$0xff]  ;;  %v220_v1 = vld [vmem:[%s2535_s1 + $0x5e8] sm:$0xff] }
  0x3e   :  { %1422 = vmatprep.subr.bf16.mxu0 %v1421_v29  ;;  %v165_v29 = vld [vmem:[%s2535_s1 + $0x430] sm:$0xff]  ;;  %v415_v31 = vcombine.high %v2156_v17, %v2168_v23  ;;  %v1501_v36 = vpack.c.bf16 %v214_v27, %v213_v26  ;;  %v172_v4 = vld [vmem:[%s2535_s1 + $0x468] sm:$0xff]  ;;  %v203_v6 = vld [vmem:[%s2535_s1 + $0x560] sm:$0xff]  ;;  %v414_v49 = vcombine.low %v2156_v17, %v2168_v23  ;;  %v416_v23 = vcombine.low %v2159_v18, %v2171_v24 }
  0x3f   :  { %1452 = vmatpush3.bf16.msra.mxu1 %v1451_v32  ;;  %v417_v32 = vcombine.high %v2159_v18, %v2171_v24  ;;  %v1471_v39 = vpack.c.bf16 %v166_v30, %v165_v29  ;;  %v201_v60 = vld [vmem:[%s2535_s1 + $0x550] sm:$0xff]  ;;  %v190_v8 = vld [vmem:[%s2535_s1 + $0x4f8] sm:$0xff]  ;;  %v204_v10 = vld [vmem:[%s2535_s1 + $0x568] sm:$0xff] }
  0x40   :  { %1454 = vmatprep.subr.bf16.mxu1 %v1453_v35  ;;  %v184_v35 = vld [vmem:[%s2535_s1 + $0x4c8] sm:$0xff]  ;;  %v1511_v5 = vpack.c.bf16 %v202_v62, %v201_v60  ;;  %v189_v7 = vld [vmem:[%s2535_s1 + $0x4f0] sm:$0xff]  ;;  %v222_v12 = vld [vmem:[%s2535_s1 + $0x5f8] sm:$0xff] }
  0x41   :  { %1424 = vmatpush3.bf16.msra.mxu0 %v1423_v38  ;;  %v198_v38 = vld [vmem:[%s2535_s1 + $0x538] sm:$0xff]  ;;  %v1473_v42 = vpack.c.bf16 %v184_v35, %v183_v34  ;;  %v221_v11 = vld [vmem:[%s2535_s1 + $0x5f0] sm:$0xff]  ;;  %v1485_v16 = vpack.c.bf16 %v190_v8, %v189_v7  ;;  %v240_v20 = vld [vmem:[%s2535_s1 + $0x688] sm:$0xff] }
  0x42   :  { %1458 = vmatprep.subr.bf16.mxu0 %v1457_v41  ;;  %v216_v41 = vld [vmem:[%s2535_s1 + $0x5c8] sm:$0xff]  ;;  %v1503_v45 = vpack.c.bf16 %v198_v38, %v197_v37  ;;  %v174_v15 = vld [vmem:[%s2535_s1 + $0x478] sm:$0xff]  ;;  %v1517_v26 = vpack.c.bf16 %v222_v12, %v221_v11  ;;  %v205_v30 = vld [vmem:[%s2535_s1 + $0x570] sm:$0xff] }
  0x43   :  { %1456 = vmatpush3.bf16.msra.mxu1 %v1455_v44  ;;  %v168_v44 = vld [vmem:[%s2535_s1 + $0x448] sm:$0xff]  ;;  %v18_v21 = vld [vmem:[%s2534_s0 + $0x18] sm:$0xff]  ;;  %v271_v37 = vld [vmem:[%s2535_s1 + $0x780] sm:$0xff] }
  0x44   :  { %675 = vmatmul.mubr.f32.vlgmr.msra.gmra.mrb[2].mxu0 %v378_v47  ;;  %1490 = vmatprep.subr.bf16.mxu1 %v1489_v48  ;;  %v186_v47 = vld [vmem:[%s2535_s1 + $0x4d8] sm:$0xff]  ;;  %v1505_v48 = vpack.c.bf16 %v216_v41, %v215_v40  ;;  %v272_v38 = vld [vmem:[%s2535_s1 + $0x788] sm:$0xff]  ;;  %v223_v40 = vld [vmem:[%s2535_s1 + $0x600] sm:$0xff] }
  0x45   :  { %1460 = vmatpush3.bf16.msra.mxu0 %v1459_v51  ;;  %814 = vmatprep.mubr.f32.mxu0 %v415_v31  ;;  %v1475_v51 = vpack.c.bf16 %v168_v44, %v167_v43  ;;  %v22_v27 = vld [vmem:[%s2534_s0 + $0x38] sm:$0xff]  ;;  %v224_v41 = vld [vmem:[%s2535_s1 + $0x608] sm:$0xff]  ;;  %v1553_v50 = vpack.c.bf16 %v272_v38, %v271_v37  ;;  %v257_v60 = vld [vmem:[%s2535_s1 + $0x710] sm:$0xff] }
  0x46   :  { %745 = vmatmul.mubr.f32.vlgmr.msra.gmra.mrb[2].mxu1 %v380_v54  ;;  %1462 = vmatprep.subr.bf16.mxu0 %v1461_v55  ;;  %v1477_v54 = vpack.c.bf16 %v186_v47, %v185_v46  ;;  %v169_v55 = vld [vmem:[%s2535_s1 + $0x450] sm:$0xff]  ;;  %v30_v29 = vld [vmem:[%s2534_s0 + $0x78] sm:$0xff]  ;;  %v419_v34 = vcombine.high %v18_v21, %v22_v27  ;;  %v256_v52 = vld [vmem:[%s2535_s1 + $0x708] sm:$0xff]  ;;  %v1523_v53 = vpack.c.bf16 %v224_v41, %v223_v40 }
  0x47   :  { %1492 = vmatpush3.bf16.msra.mxu1 %v1491_v59  ;;  %884 = vmatprep.mubr.f32.mxu1 %v417_v32  ;;  %v188_v59 = vld [vmem:[%s2535_s1 + $0x4e8] sm:$0xff]  ;;  %v206_v31 = vld [vmem:[%s2535_s1 + $0x578] sm:$0xff]  ;;  %v418_v32 = vcombine.low %v18_v21, %v22_v27  ;;  %v277_v12 = vld [vmem:[%s2535_s1 + $0x7b0] sm:$0xff] }
  0x48   :  { %1494 = vmatprep.subr.bf16.mxu1 %v1493_v63  ;;  %v1479_v63 = vpack.c.bf16 %v170_v56, %v169_v55  ;;  %v1481_v2 = vpack.c.bf16 %v188_v59, %v187_v58  ;;  %v1519_v44 = vpack.c.bf16 %v206_v31, %v205_v30  ;;  %v242_v46 = vld [vmem:[%s2535_s1 + $0x698] sm:$0xff]  ;;  %v2334_v47 = vrot.slane %v419_v34, %v1808_v22  ;;  %v225_v56 = vld [vmem:[%s2535_s1 + $0x610] sm:$0xff]  ;;  %v243_v59 = vld [vmem:[%s2535_s1 + $0x6a0] sm:$0xff] }
  0x49   :  { %1464 = vmatpush3.bf16.msra.mxu0 %v1463_v3  ;;  %v171_v3 = vld [vmem:[%s2535_s1 + $0x460] sm:$0xff]  ;;  %v258_v62 = vld [vmem:[%s2535_s1 + $0x718] sm:$0xff]  ;;  %v248_v21 = vld [vmem:[%s2535_s1 + $0x6c8] sm:$0xff] }
  0x4a   :  { %1466 = vmatprep.subr.bf16.mxu0 %v1465_v9  ;;  %v1513_v9 = vpack.c.bf16 %v220_v1, %v219_v0  ;;  %v1483_v13 = vpack.c.bf16 %v172_v4, %v171_v3  ;;  %v275_v0 = vld [vmem:[%s2535_s1 + $0x7a0] sm:$0xff]  ;;  %v276_v1 = vld [vmem:[%s2535_s1 + $0x7a8] sm:$0xff]  ;;  %v246_v7 = vld [vmem:[%s2535_s1 + $0x6b8] sm:$0xff] }
  0x4b   :  { %1496 = vmatpush3.bf16.msra.mxu1 %v1495_v14  ;;  %v173_v14 = vld [vmem:[%s2535_s1 + $0x470] sm:$0xff]  ;;  %v227_v3 = vld [vmem:[%s2535_s1 + $0x620] sm:$0xff]  ;;  %v228_v4 = vld [vmem:[%s2535_s1 + $0x628] sm:$0xff]  ;;  %v1561_v8 = vpack.c.bf16 %v276_v1, %v275_v0 }
  0x4c   :  { %1498 = vmatprep.subr.bf16.mxu1 %v1497_v19  ;;  %v239_v19 = vld [vmem:[%s2535_s1 + $0x680] sm:$0xff]  ;;  %v1531_v11 = vpack.c.bf16 %v228_v4, %v227_v3  ;;  %v262_v27 = vld [vmem:[%s2535_s1 + $0x738] sm:$0xff]  ;;  %v280_v30 = vld [vmem:[%s2535_s1 + $0x7c8] sm:$0xff] }
  0x4d   :  { %1468 = vmatpush3.bf16.msra.mxu0 %v1467_v25  ;;  %v1515_v25 = vpack.c.bf16 %v204_v10, %v203_v6  ;;  %v245_v6 = vld [vmem:[%s2535_s1 + $0x6b0] sm:$0xff]  ;;  %v260_v10 = vld [vmem:[%s2535_s1 + $0x728] sm:$0xff]  ;;  %v263_v38 = vld [vmem:[%s2535_s1 + $0x740] sm:$0xff] }
  0x4e   :  { %1470 = vmatprep.subr.bf16.mxu0 %v1469_v28  ;;  %v26_v28 = vld [vmem:[%s2534_s0 + $0x58] sm:$0xff]  ;;  %v281_v41 = vld [vmem:[%s2535_s1 + $0x7d0] sm:$0xff] }
  0x4f   :  { %1500 = vmatpush3.bf16.msra.mxu1 %v1499_v33  ;;  %v420_v33 = vcombine.low %v26_v28, %v30_v29  ;;  %v421_v35 = vcombine.high %v26_v28, %v30_v29  ;;  %v279_v29 = vld [vmem:[%s2535_s1 + $0x7c0] sm:$0xff]  ;;  %v285_v0 = vld [vmem:[%s2535_s1 + $0x7f0] sm:$0xff]  ;;  %v286_v1 = vld [vmem:[%s2535_s1 + $0x7f8] sm:$0xff] }
  0x50   :  { %1502 = vmatprep.subr.bf16.mxu1 %v1501_v36  ;;  %v1487_v36 = vpack.c.bf16 %v174_v15, %v173_v14  ;;  %v1533_v14 = vpack.c.bf16 %v246_v7, %v245_v6  ;;  %v229_v15 = vld [vmem:[%s2535_s1 + $0x630] sm:$0xff]  ;;  %v1569_v37 = vpack.c.bf16 %v280_v30, %v279_v29  ;;  %v238_v4 = vld [vmem:[%s2535_s1 + $0x678] sm:$0xff]  ;;  %v1581_v6 = vpack.c.bf16 %v286_v1, %v285_v0 }
  0x51   :  { %1472 = vmatpush3.bf16.msra.mxu0 %v1471_v39  ;;  %v1521_v39 = vpack.c.bf16 %v240_v20, %v239_v19  ;;  %v2325_v43 = vrot.slane %v420_v33, %v1808_v22  ;;  %v247_v20 = vld [vmem:[%s2535_s1 + $0x6c0] sm:$0xff]  ;;  %v232_v33 = vld [vmem:[%s2535_s1 + $0x648] sm:$0xff]  ;;  %v237_v3 = vld [vmem:[%s2535_s1 + $0x670] sm:$0xff] }
  0x52   :  { %1474 = vmatprep.subr.bf16.mxu0 %v1473_v42  ;;  %v2322_v42 = vrot.slane %v418_v32, %v1808_v22  ;;  %v1537_v31 = vpack.c.bf16 %v248_v21, %v247_v20  ;;  %v231_v32 = vld [vmem:[%s2535_s1 + $0x640] sm:$0xff]  ;;  %v269_v7 = vld [vmem:[%s2535_s1 + $0x770] sm:$0xff] }
  0x53   :  { %1504 = vmatpush3.bf16.msra.mxu1 %v1503_v45  ;;  %v241_v45 = vld [vmem:[%s2535_s1 + $0x690] sm:$0xff]  ;;  %v1539_v40 = vpack.c.bf16 %v232_v33, %v231_v32 }
  0x54   :  { %1506 = vmatprep.subr.bf16.mxu1 %v1505_v48  ;;  %v2337_v48 = vrot.slane %v421_v35, %v1808_v22  ;;  %v273_v22 = vld [vmem:[%s2535_s1 + $0x790] sm:$0xff]  ;;  %v451_v17 = vcombine.high %v2322_v42, %v2325_v43  ;;  %v1525_v55 = vpack.c.bf16 %v242_v46, %v241_v45 }
  0x55   :  { %1476 = vmatpush3.bf16.msra.mxu0 %v1475_v51  ;;  %v255_v51 = vld [vmem:[%s2535_s1 + $0x700] sm:$0xff]  ;;  %v249_v35 = vld [vmem:[%s2535_s1 + $0x6d0] sm:$0xff] }
  0x56   :  { %1478 = vmatprep.subr.bf16.mxu0 %v1477_v54  ;;  %v274_v54 = vld [vmem:[%s2535_s1 + $0x798] sm:$0xff]  ;;  %v1555_v58 = vpack.c.bf16 %v256_v52, %v255_v51  ;;  %v453_v18 = vcombine.high %v2334_v47, %v2337_v48  ;;  %v233_v46 = vld [vmem:[%s2535_s1 + $0x650] sm:$0xff]  ;;  %v251_v51 = vld [vmem:[%s2535_s1 + $0x6e0] sm:$0xff] }
  0x57   :  { %1508 = vmatpush3.bf16.msra.mxu1 %v1507_v57  ;;  %v226_v57 = vld [vmem:[%s2535_s1 + $0x618] sm:$0xff]  ;;  %v1557_v24 = vpack.c.bf16 %v274_v54, %v273_v22  ;;  %v252_v52 = vld [vmem:[%s2535_s1 + $0x6e8] sm:$0xff]  ;;  %v265_v22 = vld [vmem:[%s2535_s1 + $0x750] sm:$0xff] }
  0x58   :  { %1510 = vmatprep.subr.bf16.mxu1 %v1509_v61  ;;  %v244_v61 = vld [vmem:[%s2535_s1 + $0x6a8] sm:$0xff]  ;;  %v266_v54 = vld [vmem:[%s2535_s1 + $0x758] sm:$0xff] }
  0x59   :  { %1480 = vmatpush3.bf16.msra.mxu0 %v1479_v63  ;;  %v1527_v63 = vpack.c.bf16 %v226_v57, %v225_v56  ;;  %v1545_v56 = vpack.c.bf16 %v252_v52, %v251_v51  ;;  %v235_v57 = vld [vmem:[%s2535_s1 + $0x660] sm:$0xff] }
  0x5a   :  { %1482 = vmatprep.subr.bf16.mxu0 %v1481_v2  ;;  %v1529_v2 = vpack.c.bf16 %v244_v61, %v243_v59  ;;  %v1575_v59 = vpack.c.bf16 %v266_v54, %v265_v22  ;;  %v253_v61 = vld [vmem:[%s2535_s1 + $0x6f0] sm:$0xff] }
  0x5b   :  { %1512 = vmatpush3.bf16.msra.mxu1 %v1511_v5  ;;  %v1559_v5 = vpack.c.bf16 %v258_v62, %v257_v60  ;;  %v267_v60 = vld [vmem:[%s2535_s1 + $0x760] sm:$0xff]  ;;  %v268_v62 = vld [vmem:[%s2535_s1 + $0x768] sm:$0xff] }
  0x5c   :  { %1514 = vmatprep.subr.bf16.mxu1 %v1513_v9  ;;  %v259_v9 = vld [vmem:[%s2535_s1 + $0x720] sm:$0xff] }
  0x5d   :  { %1484 = vmatpush3.bf16.msra.mxu0 %v1483_v13  ;;  %v278_v13 = vld [vmem:[%s2535_s1 + $0x7b8] sm:$0xff]  ;;  %v1563_v19 = vpack.c.bf16 %v260_v10, %v259_v9  ;;  %v1551_v9 = vpack.c.bf16 %v238_v4, %v237_v3 }
  0x5e   :  { %1486 = vmatprep.subr.bf16.mxu0 %v1485_v16  ;;  %v230_v16 = vld [vmem:[%s2535_s1 + $0x638] sm:$0xff] }
  0x5f   :  { %1516 = vmatpush3.bf16.msra.mxu1 %v1515_v25  ;;  %v1565_v25 = vpack.c.bf16 %v278_v13, %v277_v12  ;;  %v1535_v28 = vpack.c.bf16 %v230_v16, %v229_v15  ;;  %v452_v12 = vcombine.low %v2334_v47, %v2337_v48 }
  0x60   :  { %1518 = vmatprep.subr.bf16.mxu1 %v1517_v26  ;;  %v261_v26 = vld [vmem:[%s2535_s1 + $0x730] sm:$0xff] }
  0x61   :  { %1488 = vmatpush3.bf16.msra.mxu0 %v1487_v36  ;;  %v1567_v34 = vpack.c.bf16 %v262_v27, %v261_v26  ;;  %v250_v36 = vld [vmem:[%s2535_s1 + $0x6d8] sm:$0xff] }
  0x62   :  { %1522 = vmatprep.subr.bf16.mxu0 %v1521_v39  ;;  %v264_v39 = vld [vmem:[%s2535_s1 + $0x748] sm:$0xff]  ;;  %v1541_v45 = vpack.c.bf16 %v250_v36, %v249_v35 }
  0x63   :  { %1520 = vmatpush3.bf16.msra.mxu1 %v1519_v44  ;;  %v282_v44 = vld [vmem:[%s2535_s1 + $0x7d8] sm:$0xff] }
  0x64   :  { %815 = vmatmul.mubr.f32.vlgmr.msra.gmra.mrb[4].mxu0 %v414_v49  ;;  %1554 = vmatprep.subr.bf16.mxu1 %v1553_v50  ;;  %v234_v49 = vld [vmem:[%s2535_s1 + $0x658] sm:$0xff]  ;;  %v1571_v50 = vpack.c.bf16 %v264_v39, %v263_v38 }
  0x65   :  { %1524 = vmatpush3.bf16.msra.mxu0 %v1523_v53  ;;  %954 = vmatprep.mubr.f32.mxu0 %v451_v17  ;;  %v1573_v53 = vpack.c.bf16 %v282_v44, %v281_v41  ;;  %v1543_v17 = vpack.c.bf16 %v234_v49, %v233_v46 }
  0x66   :  { %885 = vmatmul.mubr.f32.vlgmr.msra.gmra.mrb[4].mxu1 %v416_v23  ;;  %1526 = vmatprep.subr.bf16.mxu0 %v1525_v55  ;;  %v283_v23 = vld [vmem:[%s2535_s1 + $0x7e0] sm:$0xff]  ;;  %v284_v55 = vld [vmem:[%s2535_s1 + $0x7e8] sm:$0xff] }
  0x67   :  { %1556 = vmatpush3.bf16.msra.mxu1 %v1555_v58  ;;  %1024 = vmatprep.mubr.f32.mxu1 %v453_v18  ;;  %v236_v58 = vld [vmem:[%s2535_s1 + $0x668] sm:$0xff]  ;;  %v254_v18 = vld [vmem:[%s2535_s1 + $0x6f8] sm:$0xff] }
  0x68   :  { %1558 = vmatprep.subr.bf16.mxu1 %v1557_v24  ;;  %v1577_v24 = vpack.c.bf16 %v284_v55, %v283_v23 }
  0x69   :  { %1528 = vmatpush3.bf16.msra.mxu0 %v1527_v63  ;;  %v1547_v63 = vpack.c.bf16 %v236_v58, %v235_v57 }
  0x6a   :  { %1530 = vmatprep.subr.bf16.mxu0 %v1529_v2  ;;  %v1549_v2 = vpack.c.bf16 %v254_v18, %v253_v61 }
  0x6b   :  { %1560 = vmatpush3.bf16.msra.mxu1 %v1559_v5  ;;  %v1579_v5 = vpack.c.bf16 %v268_v62, %v267_v60 }
  0x6c   :  { %1562 = vmatprep.subr.bf16.mxu1 %v1561_v8  ;;  %v270_v8 = vld [vmem:[%s2535_s1 + $0x778] sm:$0xff] }
  0x6d   :  { %1532 = vmatpush3.bf16.msra.mxu0 %v1531_v11  ;;  %v1583_v10 = vpack.c.bf16 %v270_v8, %v269_v7  ;;  %v450_v11 = vcombine.low %v2322_v42, %v2325_v43 }
  0x6e   :  { %1534 = vmatprep.subr.bf16.mxu0 %v1533_v14  ;;  %v1048_v14 = vld [vmem:[%s2536_s2] ss:$0 sm:$0xff] }
  0x6f   :  { %1564 = vmatpush3.bf16.msra.mxu1 %v1563_v19 }
  0x70   :  { %1566 = vmatprep.subr.bf16.mxu1 %v1565_v25 }
  0x71   :  { %1536 = vmatpush3.bf16.msra.mxu0 %v1535_v28 }
  0x72   :  { %1538 = vmatprep.subr.bf16.mxu0 %v1537_v31 }
  0x73   :  { %1568 = vmatpush3.bf16.msra.mxu1 %v1567_v34 }
  0x74   :  { %1570 = vmatprep.subr.bf16.mxu1 %v1569_v37 }
  0x75   :  { %1540 = vmatpush3.bf16.msra.mxu0 %v1539_v40 }
  0x76   :  { %1542 = vmatprep.subr.bf16.mxu0 %v1541_v45 }
  0x77   :  { %1572 = vmatpush3.bf16.msra.mxu1 %v1571_v50 }
  0x78   :  { %1574 = vmatprep.subr.bf16.mxu1 %v1573_v53 }
  0x79   :  { %1544 = vmatpush3.bf16.msra.mxu0 %v1543_v17 }
  0x7a   :  { %1546 = vmatprep.subr.bf16.mxu0 %v1545_v56 }
  0x7b   :  { %1576 = vmatpush3.bf16.msra.mxu1 %v1575_v59 }
  0x7c   :  { %1578 = vmatprep.subr.bf16.mxu1 %v1577_v24 }
  0x7d   :  { %1548 = vmatpush3.bf16.msra.mxu0 %v1547_v63 }
  0x7e   :  { %1550 = vmatprep.subr.bf16.mxu0 %v1549_v2 }
  0x7f   :  { %1580 = vmatpush3.bf16.msra.mxu1 %v1579_v5 }
  0x80   :  { %1582 = vmatprep.subr.bf16.mxu1 %v1581_v6 }
  0x81   :  { %1552 = vmatpush3.bf16.msra.mxu0 %v1551_v9 }
  0x83   :  { %1584 = vmatpush3.bf16.msra.mxu1 %v1583_v10 }
  0x84   :  { %955 = vmatmul.mubr.f32.vlgmr.msra.gmra.mrb[6].mxu0 %v450_v11 }
  0x86   :  { %1025 = vmatmul.mubr.f32.vlgmr.msra.gmra.mrb[6].mxu1 %v452_v12 }
  0xf7   :  { %v1081_v13 = vpop.f32.mrb[0].mxu0 }
  0xf8   :  { %v1082_v15 = vpop.f32.mrb[1].mxu0 }
  0xf9   :  { %v1083_v16 = vadd.f32 %v1082_v15, %v1081_v13  ;;  %v1116_v19 = vpop.f32.mrb[0].mxu1 }
  0xfa   :  { %v1117_v20 = vpop.f32.mrb[1].mxu1 }
  0xfb   :  { %v537_v21 = vadd.f32 %v1083_v16, %v1048_v14  ;;  %v1118_v25 = vadd.f32 %v1117_v20, %v1116_v19 }
  0xfd   :  { %v607_v26 = vadd.f32 %v1118_v25, %v537_v21 }
 0x117   :  { %v1151_v42 = vpop.f32.mrb[2].mxu0 }
 0x118   :  { %v1152_v43 = vpop.f32.mrb[3].mxu0 }
 0x119   :  { %v1153_v27 = vadd.f32 %v1152_v43, %v1151_v42  ;;  %v1186_v28 = vpop.f32.mrb[2].mxu1 }
 0x11a   :  { %v1187_v47 = vpop.f32.mrb[3].mxu1 }
 0x11b   :  { %v677_v48 = vadd.f32 %v1153_v27, %v607_v26  ;;  %v1188_v29 = vadd.f32 %v1187_v47, %v1186_v28 }
 0x11d   :  { %v747_v30 = vadd.f32 %v1188_v29, %v677_v48 }
 0x137   :  { %v1221_v31 = vpop.f32.mrb[4].mxu0 }
 0x138   :  { %v1222_v32 = vpop.f32.mrb[5].mxu0 }
 0x139   :  { %v1223_v33 = vadd.f32 %v1222_v32, %v1221_v31  ;;  %v1256_v34 = vpop.f32.mrb[4].mxu1 }
 0x13a   :  { %v1257_v35 = vpop.f32.mrb[5].mxu1 }
 0x13b   :  { %v817_v36 = vadd.f32 %v1223_v33, %v747_v30  ;;  %v1258_v37 = vadd.f32 %v1257_v35, %v1256_v34 }
 0x13d   :  { %v887_v38 = vadd.f32 %v1258_v37, %v817_v36 }
 0x157   :  { %v1291_v39 = vpop.f32.mrb[6].mxu0 }
 0x158   :  { %v1292_v40 = vpop.f32.mrb[7].mxu0 }
 0x159   :  { %v1293_v41 = vadd.f32 %v1292_v40, %v1291_v39  ;;  %v1326_v44 = vpop.f32.mrb[6].mxu1 }
 0x15a   :  { %v1327_v45 = vpop.f32.mrb[7].mxu1 }
 0x15b   :  { %v957_v46 = vadd.f32 %v1293_v41, %v887_v38  ;;  %v1328_v49 = vadd.f32 %v1327_v45, %v1326_v44 }
 0x15d   :  { %v1027_v50 = vadd.f32 %v1328_v49, %v957_v46 }
 0x15f   :  { %1031 = vst.msk [vmem:[#allocation2] sm:$0xff] %vm1030_vm0, %v1027_v50 }
 0x160   :  { %1036 = vsyncadd [#allocation3], 96  ;;  %s1614_s1 = smov [#allocation2]  }
 0x161   :  { %s1037_s2 = sshll.u32 %s1614_s1, 4  ;;  %s1038_s2 = int_to_ptr.vmem [resolvable:$true] %s1037_s2 }
 0x162   :  { %s1589_s13 = scalar_lea.vmem %s1038_s2, 32  ;;  %s1593_s14 = scalar_lea.vmem %s1038_s2, 128 }
 0x163   :  { %p1590_p0 = scmp.ne.s32.totalorder %s1038_s2, %s1589_s13  ;;  %p1594_p1 = scmp.lt.s32.totalorder %s1038_s2, %s1038_s2 }
 0x164   :  { %p1595_p2 = scmp.lt.s32.totalorder %s1593_s14, %s1589_s13 }
 0x166   :  { %p1596_p3 = por %p1595_p2, %p1594_p1 }
 0x168   :  { %p1597_p4 = pnand %p1596_p3, %p1590_p0 }
 0x16a   :  { %1600 = shalt.err (!%p1597_p4)
}
 0x16b   :  { %s1601_s17 = scalar_lea.hbm %s2537_s3, 32 }
 0x16c   :  { %p1602_p5 = scmp.ne.s32.totalorder %s2537_s3, %s1601_s17  ;;  %p1605_p6 = scmp.lt.u32.totalorder %s1601_s17, %s2537_s3 }
 0x16e   :  { %p1607_p7 = pnand %p1605_p6, %p1602_p5 }
 0x170   :  { %1610 = shalt.err (!%p1607_p7)
}
 0x171   :  { %s1615_s22 = smov 32   ;;  %s1616_s23 = smov 2  }
 0x172   :  { %1043 = dma.vmem_to_hbm [thread:$0]  %s1038_s2, 32, %s2537_s3, [#allocation3], %s1615_s22, %s1615_s22, %s1616_s23  }
 0x173   :  { %1611 = dma.done.wait [#allocation3], 128  }
 0x174   :  { %1612 = vsyncadd [#allocation3], 4294967168 }
 0x175   :  { %1047 = vsyncpa [#allocation3], 1 }

</bundles_post_ra>
